<compile_context>
chip_gen: v5e
topology: v5e:2x2
jax: 0.10.0
libtpu: 0.0.40
codegen_flags: <defaults>
</compile_context>

<pallas_src>
import functools

import jax
import jax.numpy as jnp
from jax.experimental import pallas as pl
from jax.experimental.pallas import tpu as pltpu


def _round_up(x, m):
    return ((x + m - 1) // m) * m


def mlp_kernel(x_ref,
               w1_ref, b1_ref,
               w2_ref, b2_ref,
               w3_ref, b3_ref,
               w4_ref, b4_ref,
               o_ref):
    compute_dtype = x_ref.dtype
    # Hoist bias reads once per grid step (they broadcast against the batch tile).
    b1 = b1_ref[...]
    b2 = b2_ref[...]
    b3 = b3_ref[...]
    b4 = b4_ref[...]

    # Layer 1: Linear + ReLU  (bf16 x bf16 -> f32 accumulate on the MXU)
    h = jnp.dot(x_ref[...], w1_ref[...], preferred_element_type=jnp.float32)
    h = jnp.maximum(h + b1, 0.0).astype(compute_dtype)
    # Layer 2: Linear + ReLU
    h = jnp.dot(h, w2_ref[...], preferred_element_type=jnp.float32)
    h = jnp.maximum(h + b2, 0.0).astype(compute_dtype)
    # Layer 3: Linear + ReLU
    h = jnp.dot(h, w3_ref[...], preferred_element_type=jnp.float32)
    h = jnp.maximum(h + b3, 0.0).astype(compute_dtype)
    # Layer 4: Linear (no activation)
    out = jnp.dot(h, w4_ref[...], preferred_element_type=jnp.float32)
    o_ref[...] = (out + b4).astype(o_ref.dtype)


@functools.partial(jax.jit, static_argnames=("compute_dtype", "block_batch"))
def mlp_forward(x, params, *, compute_dtype=jnp.bfloat16, block_batch=256):
    (w1, b1), (w2, b2), (w3, b3), (w4, b4) = params
    batch, in_size = x.shape
    hid = w1.shape[1]
    out_size = w4.shape[1]

    # Lane-align feature dims (128) and sublane-align batch (8).
    in_p = _round_up(in_size, 128)
    hid_p = _round_up(hid, 128)
    out_p = _round_up(out_size, 128)
    batch_8 = _round_up(batch, 8)
    tb = min(block_batch, batch_8)          # batch tile, multiple of 8
    batch_p = _round_up(batch_8, tb)
    grid = (batch_p // tb,)

    def pad2(a, rows, cols, dtype):
        a = jnp.pad(a, ((0, rows - a.shape[0]), (0, cols - a.shape[1])))
        return a.astype(dtype)

    xp = pad2(x, batch_p, in_p, compute_dtype)
    w1p = pad2(w1, in_p, hid_p, compute_dtype)
    w2p = pad2(w2, hid_p, hid_p, compute_dtype)
    w3p = pad2(w3, hid_p, hid_p, compute_dtype)
    w4p = pad2(w4, hid_p, out_p, compute_dtype)
    b1p = pad2(b1, 1, hid_p, jnp.float32)
    b2p = pad2(b2, 1, hid_p, jnp.float32)
    b3p = pad2(b3, 1, hid_p, jnp.float32)
    b4p = pad2(b4, 1, out_p, jnp.float32)

    def resident(shape):
        # Weights / biases: same block every grid step -> stays VMEM-resident.
        return pl.BlockSpec(shape, lambda i: (0, 0))

    itemsize = jnp.dtype(compute_dtype).itemsize
    weight_bytes = (w1p.size + w2p.size + w3p.size + w4p.size) * itemsize
    bias_bytes = (b1p.size + b2p.size + b3p.size + b4p.size) * 4
    act_bytes = xp.size * itemsize + batch_p * out_p * 4
    flops = 2 * batch_p * (in_p * hid_p + 2 * hid_p * hid_p + hid_p * out_p)
    cost = pl.CostEstimate(
        flops=flops,
        transcendentals=0,
        bytes_accessed=weight_bytes + bias_bytes + act_bytes,
    )

    # VMEM budget: resident weights/biases + double-buffered x/out tiles,
    # with headroom; clamp below the v7x 64 MiB physical ceiling.
    tile_bytes = 2 * (tb * in_p * itemsize + tb * out_p * 4)
    needed = weight_bytes + bias_bytes + tile_bytes + tb * hid_p * 4
    vmem_limit = int(min(max(2 * needed, 32 * 1024 * 1024), 60 * 1024 * 1024))

    out_padded = pl.pallas_call(
        mlp_kernel,
        out_shape=jax.ShapeDtypeStruct((batch_p, out_p), jnp.float32),
        grid=grid,
        in_specs=[
            pl.BlockSpec((tb, in_p), lambda i: (i, 0)),   # x: tiled over batch
            resident((in_p, hid_p)), resident((1, hid_p)),
            resident((hid_p, hid_p)), resident((1, hid_p)),
            resident((hid_p, hid_p)), resident((1, hid_p)),
            resident((hid_p, out_p)), resident((1, out_p)),
        ],
        out_specs=pl.BlockSpec((tb, out_p), lambda i: (i, 0)),
        compiler_params=pltpu.CompilerParams(
            dimension_semantics=("parallel",),
            vmem_limit_bytes=vmem_limit,
        ),
        cost_estimate=cost,
    )(xp, w1p, b1p, w2p, b2p, w3p, b3p, w4p, b4p)

    return out_padded[:batch, :out_size]


def init_mlp_params(key, input_size, output_size, hidden_size, init_w=0.003):
    """Deterministic init mirroring the PyTorch module:
    - hidden layers: PyTorch default Linear init U(-1/sqrt(fan_in), 1/sqrt(fan_in))
    - final layer: U(-init_w, init_w) for both weight and bias.
    Weights stored transposed as (in, out); biases as (1, out)."""
    keys = jax.random.split(key, 8)

    def layer(kw, kb, fan_in, fan_out, bound):
        w = jax.random.uniform(kw, (fan_in, fan_out), jnp.float32, -bound, bound)
        b = jax.random.uniform(kb, (1, fan_out), jnp.float32, -bound, bound)
        return w, b

    p1 = layer(keys[0], keys[1], input_size, hidden_size, 1.0 / float(jnp.sqrt(input_size)))
    p2 = layer(keys[2], keys[3], hidden_size, hidden_size, 1.0 / float(jnp.sqrt(hidden_size)))
    p3 = layer(keys[4], keys[5], hidden_size, hidden_size, 1.0 / float(jnp.sqrt(hidden_size)))
    p4 = layer(keys[6], keys[7], hidden_size, output_size, init_w)
    return (p1, p2, p3, p4)


def mlp_reference(x, params, compute_dtype=jnp.bfloat16):
    """Pure-JAX reference using the same bf16-in / f32-accumulate precision path."""
    (w1, b1), (w2, b2), (w3, b3), (w4, b4) = params
    cdt = compute_dtype
    h = jnp.dot(x.astype(cdt), w1.astype(cdt), preferred_element_type=jnp.float32)
    h = jnp.maximum(h + b1, 0.0).astype(cdt)
    h = jnp.dot(h, w2.astype(cdt), preferred_element_type=jnp.float32)
    h = jnp.maximum(h + b2, 0.0).astype(cdt)
    h = jnp.dot(h, w3.astype(cdt), preferred_element_type=jnp.float32)
    h = jnp.maximum(h + b3, 0.0).astype(cdt)
    out = jnp.dot(h, w4.astype(cdt), preferred_element_type=jnp.float32)
    return out + b4


if __name__ == "__main__":
    batch = 8
    input_size = 16
    hidden_size = 32
    output_size = 8

    key = jax.random.PRNGKey(0)
    kx, kp = jax.random.split(key)
    x = jax.random.normal(kx, (batch, input_size), jnp.float32)
    params = init_mlp_params(kp, input_size, output_size, hidden_size)

    out = mlp_forward(x, params)
    out = jax.block_until_ready(out)

    ref = mlp_reference(x, params)
    assert out.shape == (batch, output_size)
    assert jnp.allclose(out, ref, atol=1e-3, rtol=1e-3), "mismatch vs reference"

    print("KERNEL_OK")
</pallas_src>

<mosaic_0001>
module attributes {stable_mosaic.version = 11 : i64} {
  func.func @mlp_kernel(%arg0: i32, %arg1: memref<8x128xbf16, #tpu.memory_space<vmem>>, %arg2: memref<128x128xbf16, #tpu.memory_space<vmem>>, %arg3: memref<1x128xf32, #tpu.memory_space<vmem>>, %arg4: memref<128x128xbf16, #tpu.memory_space<vmem>>, %arg5: memref<1x128xf32, #tpu.memory_space<vmem>>, %arg6: memref<128x128xbf16, #tpu.memory_space<vmem>>, %arg7: memref<1x128xf32, #tpu.memory_space<vmem>>, %arg8: memref<128x128xbf16, #tpu.memory_space<vmem>>, %arg9: memref<1x128xf32, #tpu.memory_space<vmem>>, %arg10: memref<8x128xf32, #tpu.memory_space<vmem>>) attributes {dimension_semantics = [#tpu.dimension_semantics<parallel>], iteration_bounds = array<i64: 1>, scalar_prefetch = 0 : i64, scratch_operands = 0 : i64, tpu.core_type = #tpu.core_type<tc>, window_params = [{transform_indices = @transform_0, window_bounds = array<i64: 8, 128>}, {pipeline_mode = #tpu.pipeline_mode<synchronous>, transform_indices = @transform_1, window_bounds = array<i64: 128, 128>}, {pipeline_mode = #tpu.pipeline_mode<synchronous>, transform_indices = @transform_2, window_bounds = array<i64: 1, 128>}, {pipeline_mode = #tpu.pipeline_mode<synchronous>, transform_indices = @transform_3, window_bounds = array<i64: 128, 128>}, {pipeline_mode = #tpu.pipeline_mode<synchronous>, transform_indices = @transform_4, window_bounds = array<i64: 1, 128>}, {pipeline_mode = #tpu.pipeline_mode<synchronous>, transform_indices = @transform_5, window_bounds = array<i64: 128, 128>}, {pipeline_mode = #tpu.pipeline_mode<synchronous>, transform_indices = @transform_6, window_bounds = array<i64: 1, 128>}, {pipeline_mode = #tpu.pipeline_mode<synchronous>, transform_indices = @transform_7, window_bounds = array<i64: 128, 128>}, {pipeline_mode = #tpu.pipeline_mode<synchronous>, transform_indices = @transform_8, window_bounds = array<i64: 1, 128>}, {transform_indices = @transform_9, window_bounds = array<i64: 8, 128>}]} {
    %c0 = arith.constant 0 : index
    %c0_0 = arith.constant 0 : index
    %0 = vector.load %arg3[%c0, %c0_0] : memref<1x128xf32, #tpu.memory_space<vmem>>, vector<1x128xf32>
    %c0_1 = arith.constant 0 : index
    %c0_2 = arith.constant 0 : index
    %1 = vector.load %arg5[%c0_1, %c0_2] : memref<1x128xf32, #tpu.memory_space<vmem>>, vector<1x128xf32>
    %c0_3 = arith.constant 0 : index
    %c0_4 = arith.constant 0 : index
    %2 = vector.load %arg7[%c0_3, %c0_4] : memref<1x128xf32, #tpu.memory_space<vmem>>, vector<1x128xf32>
    %c0_5 = arith.constant 0 : index
    %c0_6 = arith.constant 0 : index
    %3 = vector.load %arg9[%c0_5, %c0_6] : memref<1x128xf32, #tpu.memory_space<vmem>>, vector<1x128xf32>
    %c0_7 = arith.constant 0 : index
    %c0_8 = arith.constant 0 : index
    %4 = vector.load %arg1[%c0_7, %c0_8] : memref<8x128xbf16, #tpu.memory_space<vmem>>, vector<8x128xbf16>
    %c0_9 = arith.constant 0 : index
    %c0_10 = arith.constant 0 : index
    %5 = vector.load %arg2[%c0_9, %c0_10] : memref<128x128xbf16, #tpu.memory_space<vmem>>, vector<128x128xbf16>
    %cst = arith.constant dense<0.000000e+00> : vector<8x128xf32>
    %6 = tpu.matmul %4, %5, %cst {dimension_numbers = #tpu.dot_dimension_numbers<[1], [0], [0], [1], [0, 0, 1, 1], [], []>} : vector<8x128xbf16>, vector<128x128xbf16>, vector<8x128xf32> -> vector<8x128xf32>
    %7 = vector.broadcast %0 : vector<1x128xf32> to vector<8x128xf32>
    %8 = arith.addf %6, %7 : vector<8x128xf32>
    %cst_11 = arith.constant 0.000000e+00 : f32
    %9 = vector.broadcast %cst_11 : f32 to vector<8x128xf32>
    %10 = arith.maximumf %8, %9 : vector<8x128xf32>
    %11 = arith.truncf %10 : vector<8x128xf32> to vector<8x128xbf16>
    %c0_12 = arith.constant 0 : index
    %c0_13 = arith.constant 0 : index
    %12 = vector.load %arg4[%c0_12, %c0_13] : memref<128x128xbf16, #tpu.memory_space<vmem>>, vector<128x128xbf16>
    %cst_14 = arith.constant dense<0.000000e+00> : vector<8x128xf32>
    %13 = tpu.matmul %11, %12, %cst_14 {dimension_numbers = #tpu.dot_dimension_numbers<[1], [0], [0], [1], [0, 0, 1, 1], [], []>} : vector<8x128xbf16>, vector<128x128xbf16>, vector<8x128xf32> -> vector<8x128xf32>
    %14 = vector.broadcast %1 : vector<1x128xf32> to vector<8x128xf32>
    %15 = arith.addf %13, %14 : vector<8x128xf32>
    %cst_15 = arith.constant 0.000000e+00 : f32
    %16 = vector.broadcast %cst_15 : f32 to vector<8x128xf32>
    %17 = arith.maximumf %15, %16 : vector<8x128xf32>
    %18 = arith.truncf %17 : vector<8x128xf32> to vector<8x128xbf16>
    %c0_16 = arith.constant 0 : index
    %c0_17 = arith.constant 0 : index
    %19 = vector.load %arg6[%c0_16, %c0_17] : memref<128x128xbf16, #tpu.memory_space<vmem>>, vector<128x128xbf16>
    %cst_18 = arith.constant dense<0.000000e+00> : vector<8x128xf32>
    %20 = tpu.matmul %18, %19, %cst_18 {dimension_numbers = #tpu.dot_dimension_numbers<[1], [0], [0], [1], [0, 0, 1, 1], [], []>} : vector<8x128xbf16>, vector<128x128xbf16>, vector<8x128xf32> -> vector<8x128xf32>
    %21 = vector.broadcast %2 : vector<1x128xf32> to vector<8x128xf32>
    %22 = arith.addf %20, %21 : vector<8x128xf32>
    %cst_19 = arith.constant 0.000000e+00 : f32
    %23 = vector.broadcast %cst_19 : f32 to vector<8x128xf32>
    %24 = arith.maximumf %22, %23 : vector<8x128xf32>
    %25 = arith.truncf %24 : vector<8x128xf32> to vector<8x128xbf16>
    %c0_20 = arith.constant 0 : index
    %c0_21 = arith.constant 0 : index
    %26 = vector.load %arg8[%c0_20, %c0_21] : memref<128x128xbf16, #tpu.memory_space<vmem>>, vector<128x128xbf16>
    %cst_22 = arith.constant dense<0.000000e+00> : vector<8x128xf32>
    %27 = tpu.matmul %25, %26, %cst_22 {dimension_numbers = #tpu.dot_dimension_numbers<[1], [0], [0], [1], [0, 0, 1, 1], [], []>} : vector<8x128xbf16>, vector<128x128xbf16>, vector<8x128xf32> -> vector<8x128xf32>
    %28 = vector.broadcast %3 : vector<1x128xf32> to vector<8x128xf32>
    %29 = arith.addf %27, %28 : vector<8x128xf32>
    %c0_23 = arith.constant 0 : index
    %c0_24 = arith.constant 0 : index
    %30 = vector.load %arg10[%c0_23, %c0_24] : memref<8x128xf32, #tpu.memory_space<vmem>>, vector<8x128xf32>
    tpu.vector_store %arg10[%c0_23, %c0_24], %29 {strides = array<i32>} : memref<8x128xf32, #tpu.memory_space<vmem>>, vector<8x128xf32>,
    return
  }
  func.func @transform_0(%arg0: i32) -> (i32, i32) {
    %c0_i32 = arith.constant 0 : i32
    %c0_i32_0 = arith.constant 0 : i32
    return %arg0, %c0_i32 : i32, i32
  }
  func.func @transform_1(%arg0: i32) -> (i32, i32) {
    %c0_i32 = arith.constant 0 : i32
    %c0_i32_0 = arith.constant 0 : i32
    %c0_i32_1 = arith.constant 0 : i32
    return %c0_i32, %c0_i32_0 : i32, i32
  }
  func.func @transform_2(%arg0: i32) -> (i32, i32) {
    %c0_i32 = arith.constant 0 : i32
    %c0_i32_0 = arith.constant 0 : i32
    %c0_i32_1 = arith.constant 0 : i32
    return %c0_i32, %c0_i32_0 : i32, i32
  }
  func.func @transform_3(%arg0: i32) -> (i32, i32) {
    %c0_i32 = arith.constant 0 : i32
    %c0_i32_0 = arith.constant 0 : i32
    %c0_i32_1 = arith.constant 0 : i32
    return %c0_i32, %c0_i32_0 : i32, i32
  }
  func.func @transform_4(%arg0: i32) -> (i32, i32) {
    %c0_i32 = arith.constant 0 : i32
    %c0_i32_0 = arith.constant 0 : i32
    %c0_i32_1 = arith.constant 0 : i32
    return %c0_i32, %c0_i32_0 : i32, i32
  }
  func.func @transform_5(%arg0: i32) -> (i32, i32) {
    %c0_i32 = arith.constant 0 : i32
    %c0_i32_0 = arith.constant 0 : i32
    %c0_i32_1 = arith.constant 0 : i32
    return %c0_i32, %c0_i32_0 : i32, i32
  }
  func.func @transform_6(%arg0: i32) -> (i32, i32) {
    %c0_i32 = arith.constant 0 : i32
    %c0_i32_0 = arith.constant 0 : i32
    %c0_i32_1 = arith.constant 0 : i32
    return %c0_i32, %c0_i32_0 : i32, i32
  }
  func.func @transform_7(%arg0: i32) -> (i32, i32) {
    %c0_i32 = arith.constant 0 : i32
    %c0_i32_0 = arith.constant 0 : i32
    %c0_i32_1 = arith.constant 0 : i32
    return %c0_i32, %c0_i32_0 : i32, i32
  }
  func.func @transform_8(%arg0: i32) -> (i32, i32) {
    %c0_i32 = arith.constant 0 : i32
    %c0_i32_0 = arith.constant 0 : i32
    %c0_i32_1 = arith.constant 0 : i32
    return %c0_i32, %c0_i32_0 : i32, i32
  }
  func.func @transform_9(%arg0: i32) -> (i32, i32) {
    %c0_i32 = arith.constant 0 : i32
    %c0_i32_0 = arith.constant 0 : i32
    return %arg0, %c0_i32 : i32, i32
  }
}

</mosaic_0001>

<bundles_post_ra>
// kernel: mlp_forward.1
= control target key start
LH: loop header
LB: loop body
LE: loop exit
PB: predicated region body
PF: predicated region fallthrough
CT: control target
= control target key end

     0   :  { %s737_s0 = inlined_call_operand.vmem [shape: bf16[8,128], index: 0, kind: input, shape index: {}]   ;;  %s738_s1 = inlined_call_operand.vmem [shape: bf16[128,128], index: 1, kind: input, shape index: {}]   ;;  %s739_s2 = inlined_call_operand.vmem [shape: f32[1,128], index: 2, kind: input, shape index: {}]   ;;  %s740_s3 = inlined_call_operand.vmem [shape: bf16[128,128], index: 3, kind: input, shape index: {}]   ;;  %s741_s4 = inlined_call_operand.vmem [shape: f32[1,128], index: 4, kind: input, shape index: {}]   ;;  %s742_s5 = inlined_call_operand.vmem [shape: bf16[128,128], index: 5, kind: input, shape index: {}]   ;;  %s743_s6 = inlined_call_operand.vmem [shape: f32[1,128], index: 6, kind: input, shape index: {}]   ;;  %s744_s7 = inlined_call_operand.vmem [shape: bf16[128,128], index: 7, kind: input, shape index: {}]   ;;  %s745_s8 = inlined_call_operand.vmem [shape: f32[1,128], index: 8, kind: input, shape index: {}]   ;;  %s746_s9 = inlined_call_operand.hbm [shape: f32[8,128], index: 9, kind: output, shape index: {}]  }
   0x1   :  { %v516_v0 = vld [vmem:[%s738_s1 + $0x38] sm:$0xff]  ;;  %v515_v1 = vld [vmem:[%s738_s1 + $0x30] sm:$0xff]  ;;  %v514_v3 = vld [vmem:[%s738_s1 + $0x28] sm:$0xff] }
   0x2   :  { %105 = vmatpush.bf16.msra.mxu0 %v516_v0  ;;  %v524_v2 = vld [vmem:[%s740_s3 + $0x38] sm:$0xff]  ;;  %v523_v4 = vld [vmem:[%s740_s3 + $0x30] sm:$0xff] }
   0x3   :  { %187 = vmatpush.bf16.msra.mxu1 %v524_v2 }
   0x6   :  { %106 = vmatpush.bf16.msra.mxu0 %v515_v1 }
   0x7   :  { %14 = vsyncpa [#allocation3], 0  ;;  %188 = vmatpush.bf16.msra.mxu1 %v523_v4  ;;  %v522_v5 = vld [vmem:[%s740_s3 + $0x28] sm:$0xff]  ;;  %v513_v6 = vld [vmem:[%s738_s1 + $0x20] sm:$0xff]  ;;  %s572_s11 = smov [#allocation2]  }
   0x8   :  { %v521_v7 = vld [vmem:[%s740_s3 + $0x20] sm:$0xff]  ;;  %v512_v8 = vld [vmem:[%s738_s1 + $0x18] sm:$0xff]  ;;  %v511_v10 = vld [vmem:[%s738_s1 + $0x10] sm:$0xff]  ;;  %s370_s12 = sshll.u32 %s572_s11, 4  ;;  %s371_s12 = int_to_ptr.vmem [resolvable:$true] %s370_s12 }
   0x9   :  { %v520_v9 = vld [vmem:[%s740_s3 + $0x18] sm:$0xff]  ;;  %v519_v11 = vld [vmem:[%s740_s3 + $0x10] sm:$0xff]  ;;  %v510_v12 = vld [vmem:[%s738_s1 + $0x8] sm:$0xff] }
   0xa   :  { %107 = vmatpush.bf16.msra.mxu0 %v514_v3  ;;  %v509_v13 = vld [vmem:[%s738_s1] sm:$0xff]  ;;  %v518_v15 = vld [vmem:[%s740_s3 + $0x8] sm:$0xff]  ;;  %v532_v17 = vld [vmem:[%s742_s5 + $0x38] sm:$0xff] }
   0xb   :  { %189 = vmatpush.bf16.msra.mxu1 %v522_v5  ;;  %v37_v14 = vld [vmem:[%s737_s0] sm:$0xf]  ;;  %269 = vmatpush.bf16.msra.mxu2 %v532_v17  ;;  %v531_v18 = vld [vmem:[%s742_s5 + $0x30] sm:$0xff]  ;;  %v530_v19 = vld [vmem:[%s742_s5 + $0x28] sm:$0xff] }
   0xc   :  { %v517_v16 = vld [vmem:[%s740_s3] sm:$0xff]  ;;  %v528_v21 = vld [vmem:[%s742_s5 + $0x18] sm:$0xff]  ;;  %v527_v22 = vld [vmem:[%s742_s5 + $0x10] sm:$0xff] }
   0xd   :  { %v529_v20 = vld [vmem:[%s742_s5 + $0x20] sm:$0xff]  ;;  %v526_v29 = vld [vmem:[%s742_s5 + $0x8] sm:$0xff]  ;;  %v540_v31 = vld [vmem:[%s744_s7 + $0x38] sm:$0xff] }
   0xe   :  { %108 = vmatpush.bf16.msra.mxu0 %v513_v6  ;;  %v542_v23 = vld [vmem:[%s739_s2] ss:$0 sm:$0xff]  ;;  %351 = vmatpush.bf16.msra.mxu3 %v540_v31  ;;  %v539_v32 = vld [vmem:[%s744_s7 + $0x30] sm:$0xff]  ;;  %v538_v33 = vld [vmem:[%s744_s7 + $0x28] sm:$0xff] }
   0xf   :  { %190 = vmatpush.bf16.msra.mxu1 %v521_v7  ;;  %270 = vmatpush.bf16.msra.mxu2 %v531_v18  ;;  %v525_v30 = vld [vmem:[%s742_s5] sm:$0xff]  ;;  %v536_v35 = vld [vmem:[%s744_s7 + $0x18] sm:$0xff]  ;;  %v535_v36 = vld [vmem:[%s744_s7 + $0x10] sm:$0xff] }
  0x10   :  { %v537_v34 = vld [vmem:[%s744_s7 + $0x20] sm:$0xff]  ;;  %v534_v43 = vld [vmem:[%s744_s7 + $0x8] sm:$0xff] }
  0x11   :  { %v543_v37 = vld [vmem:[%s741_s4] ss:$0 sm:$0xff] }
  0x12   :  { %109 = vmatpush.bf16.msra.mxu0 %v512_v8  ;;  %352 = vmatpush.bf16.msra.mxu3 %v539_v32  ;;  %v533_v44 = vld [vmem:[%s744_s7] sm:$0xff]  ;;  %s372_s7 = sshll.u32 %s746_s9, 4  ;;  %s373_s7 = int_to_ptr.hbm [resolvable:$true] %s372_s7 }
  0x13   :  { %191 = vmatpush.bf16.msra.mxu1 %v520_v9  ;;  %271 = vmatpush.bf16.msra.mxu2 %v530_v19  ;;  %v544_v45 = vld [vmem:[%s743_s6] ss:$0 sm:$0xff] }
  0x14   :  { %v545_v51 = vld [vmem:[%s745_s8] ss:$0 sm:$0xff] }
  0x16   :  { %110 = vmatpush.bf16.msra.mxu0 %v511_v10  ;;  %353 = vmatpush.bf16.msra.mxu3 %v538_v33 }
  0x17   :  { %192 = vmatpush.bf16.msra.mxu1 %v519_v11  ;;  %272 = vmatpush.bf16.msra.mxu2 %v529_v20 }
  0x1a   :  { %111 = vmatpush.bf16.msra.mxu0 %v510_v12  ;;  %354 = vmatpush.bf16.msra.mxu3 %v537_v34 }
  0x1b   :  { %193 = vmatpush.bf16.msra.mxu1 %v518_v15  ;;  %273 = vmatpush.bf16.msra.mxu2 %v528_v21 }
  0x1e   :  { %112 = vmatpush.bf16.msra.mxu0 %v509_v13  ;;  %355 = vmatpush.bf16.msra.mxu3 %v536_v35 }
  0x1f   :  { %194 = vmatpush.bf16.msra.mxu1 %v517_v16  ;;  %274 = vmatpush.bf16.msra.mxu2 %v527_v22 }
  0x21   :  { %113 = vmatmul.bf16.vlgmr.msra.gmra.mxu0 %v37_v14 }
  0x22   :  { %356 = vmatpush.bf16.msra.mxu3 %v535_v36 }
  0x23   :  { %275 = vmatpush.bf16.msra.mxu2 %v526_v29 }
  0x26   :  { %357 = vmatpush.bf16.msra.mxu3 %v534_v43 }
  0x27   :  { %276 = vmatpush.bf16.msra.mxu2 %v525_v30 }
  0x2a   :  { %358 = vmatpush.bf16.msra.mxu3 %v533_v44 }
  0x9e   :  { %v114_v24 = vpop.f32.mrf.mxu0 }
  0x9f   :  { %v115_v25 = vadd.f32 %v542_v23, %v114_v24 }
  0xa1   :  { %v118_v26 = vmax.f32 %v115_v25, 0.0 }
  0xa3   :  { %v119_v27 = vpack.c.bf16 %v118_v26, %v118_v26 }
  0xa5   :  { %195 = vmatmul.bf16.vlgmr.msra.gmra.mxu1 %v119_v27 }
  0xa6   :  { %v116_v28 = vpop.f32.mrf.mxu0 }
 0x122   :  { %v196_v38 = vpop.f32.mrf.mxu1 }
 0x123   :  { %v197_v39 = vadd.f32 %v543_v37, %v196_v38 }
 0x125   :  { %v200_v40 = vmax.f32 %v197_v39, 0.0 }
 0x127   :  { %v201_v41 = vpack.c.bf16 %v200_v40, %v200_v40 }
 0x129   :  { %277 = vmatmul.bf16.vlgmr.msra.gmra.mxu2 %v201_v41 }
 0x12a   :  { %v198_v42 = vpop.f32.mrf.mxu1 }
 0x1ac   :  { %v278_v46 = vpop.f32.mrf.mxu2 }
 0x1ad   :  { %v279_v47 = vadd.f32 %v544_v45, %v278_v46 }
 0x1af   :  { %v282_v48 = vmax.f32 %v279_v47, 0.0 }
 0x1b1   :  { %v283_v49 = vpack.c.bf16 %v282_v48, %v282_v48 }
 0x1b3   :  { %359 = vmatmul.bf16.vlgmr.msra.gmra.mxu3 %v283_v49 }
 0x1b4   :  { %v280_v50 = vpop.f32.mrf.mxu2 }
 0x236   :  { %v360_v52 = vpop.f32.mrf.mxu3 }
 0x237   :  { %v361_v53 = vadd.f32 %v545_v51, %v360_v52 }
 0x239   :  { %364 = vst [vmem:[#allocation2] sm:$0xff] %v361_v53 }
 0x23a   :  { %375 = dma.vmem_to_hbm [thread:$0]  %s371_s12, 128, %s373_s7, [#allocation3]  }
 0x23e   :  { %v362_v54 = vpop.f32.mrf.mxu3 }
 0x23f   :  { %570 = dma.done.wait [#allocation3], 128  }
 0x240   :  { %571 = vsyncadd [#allocation3], 4294967168 }
 0x241   :  { %380 = vsyncpa [#allocation3], 1 }

</bundles_post_ra>
